<compile_context>
chip_gen: v7x
topology: tpu7x:2x2x1
jax: 0.10.0
libtpu: 0.0.40
codegen_flags: <defaults>
</compile_context>

<pallas_src>
import functools

import jax
import jax.numpy as jnp
from jax.experimental import pallas as pl
from jax.experimental.pallas import tpu as pltpu

BN_EPS = 1e-5


# -----------------------------------------------------------------------------
# Fused kernel: single invocation, every operand VMEM-resident.
# -----------------------------------------------------------------------------
def _ffc_fused_kernel(x_ref, wa_ref, ba_ref, wfu_ref, bfu_ref,
                      wlfu_ref, blfu_ref, wc2_ref, out_ref,
                      *, out_cl, out_cg, mid, bnq):
    """Whole FFC_BN_ACT forward (all batches) in one shot.

    x_ref : (cin, 4*bnq)  activations, pixel axis = (quadrant, batch, pixel),
            quadrant index q = 2*w_half + h_half (torch LFU split order).
    wa/ba : fused first-stage conv (BN pre-folded), rows =
            [BN_l*(l2l|g2l) | BN_g*l2g | BN_c1*conv1].
    out_ref: (out_cl + out_cg, 4*bnq), rows = [out_xl | out_xg].
    """
    x = x_ref[...]                                                 # (cin, N)

    # ---- one MXU dot for every conv that reads the module inputs.
    a = jnp.dot(wa_ref[...], x, preferred_element_type=jnp.float32) + ba_ref[...]

    r1, r2 = out_cl, out_cl + out_cg
    # local branch done: out_xl = ReLU(BN_l(convl2l(x_l) + convg2l(x_g)))
    out_ref[0:r1, :] = jnp.maximum(a[0:r1], 0.0).astype(out_ref.dtype)

    cl2g = a[r1:r2]                         # BN_g-scaled convl2g (+ BN_g shift)
    y = jnp.maximum(a[r2:r2 + mid], 0.0)    # SpectralTransform conv1 output

    # ---- FourierUnit (FFT stripped in the source): 1x1 conv + BN + ReLU.
    fu = jnp.maximum(
        jnp.dot(wfu_ref[...], y, preferred_element_type=jnp.float32)
        + bfu_ref[...], 0.0)                                        # (mid, N)

    # ---- LFU: 2x2 spatial split -> 1x1 conv + BN + ReLU -> 2x2 tile.
    # Quadrant slabs are contiguous, vreg-aligned 128-lane slices; the split
    # is slicing + a tiny sublane concat, the conv is one small MXU dot.
    cq = mid // 4
    y_split = jnp.concatenate(
        [y[0:cq, q * bnq:(q + 1) * bnq] for q in range(4)], axis=0)  # (4*cq, bnq)
    xs_q = jnp.maximum(
        jnp.dot(wlfu_ref[...], y_split, preferred_element_type=jnp.float32)
        + blfu_ref[...], 0.0)                                        # (mid, bnq)

    # ---- conv2 on (y + fu + xs) plus the l->g path (BN_g shift already in
    # cl2g).  xs is the 2x2 tiling of xs_q, so its conv2 contribution is the
    # same for every quadrant: compute it once and add per quadrant slab.
    wc2 = wc2_ref[...]
    base = cl2g + jnp.dot(wc2, y + fu, preferred_element_type=jnp.float32)
    t = jnp.dot(wc2, xs_q, preferred_element_type=jnp.float32)       # (out_cg, bnq)
    for q in range(4):
        lo = q * bnq
        out_ref[r1:r2, lo:lo + bnq] = jnp.maximum(
            base[:, lo:lo + bnq] + t, 0.0).astype(out_ref.dtype)


# -----------------------------------------------------------------------------
# One-time parameter folding (outside the per-call jit path)
# -----------------------------------------------------------------------------
def _bn_fold(bn, eps=BN_EPS):
    gamma, beta, mean, var = bn
    scale = gamma * jax.lax.rsqrt(var + eps)
    return scale, beta - mean * scale


def fold_params(p):
    """Fold inference BatchNorm into weights and per-dot bias vectors.

    Call ONCE; the returned dict is what ffc_bn_act_forward consumes.
    """
    in_cl = p['w_l2l'].shape[1]
    in_cg = p['w_g2l'].shape[1]
    out_cl = p['w_l2l'].shape[0]
    out_cg = p['w_c2'].shape[0]
    mid = p['w_c1'].shape[0]

    scale_l, shift_l = _bn_fold(p['bn_l'])
    scale_g, shift_g = _bn_fold(p['bn_g'])
    scale_c1, shift_c1 = _bn_fold(p['bn_c1'])
    scale_fu, shift_fu = _bn_fold(p['bn_fu'])
    scale_lfu, shift_lfu = _bn_fold(p['bn_lfu'])

    # Fused first-stage operand: every conv that touches the module inputs.
    row_l = jnp.concatenate([scale_l[:, None] * p['w_l2l'],
                             scale_l[:, None] * p['w_g2l']], axis=1)
    row_g = jnp.concatenate([scale_g[:, None] * p['w_l2g'],
                             jnp.zeros((out_cg, in_cg), jnp.float32)], axis=1)
    row_c1 = jnp.concatenate([jnp.zeros((mid, in_cl), jnp.float32),
                              scale_c1[:, None] * p['w_c1']], axis=1)
    w_a = jnp.concatenate([row_l, row_g, row_c1], axis=0)            # (rows, cin)
    b_a = jnp.concatenate([shift_l, shift_g, shift_c1], axis=0)[:, None]

    return {
        'w_a': w_a, 'b_a': b_a,
        'w_fu': scale_fu[:, None] * p['w_fu'], 'b_fu': shift_fu[:, None],
        'w_lfu': scale_lfu[:, None] * p['w_lfu'], 'b_lfu': shift_lfu[:, None],
        'w_c2': scale_g[:, None] * p['w_c2'],
    }


# -----------------------------------------------------------------------------
# Forward wrapper: one input reorder -> one pallas_call -> one output reorder.
# -----------------------------------------------------------------------------
def ffc_bn_act_forward(fw, x_l, x_g):
    """FFC_BN_ACT.forward((x_l, x_g)) -> (out_xl, out_xg), NCHW float32."""
    b, in_cl, h, w = x_l.shape
    in_cg = x_g.shape[1]
    assert h % 2 == 0 and w % 2 == 0, "LFU requires even spatial dims"

    out_cg, mid = fw['w_c2'].shape
    out_cl = fw['w_a'].shape[0] - out_cg - mid
    assert mid % 4 == 0

    cin = in_cl + in_cg
    cout = out_cl + out_cg
    h2, w2 = h // 2, w // 2
    nq = h2 * w2
    bnq = b * nq                 # lanes per LFU quadrant slab (128 for B=2,16x16)
    ntot = 4 * bnq

    # Single input layout op: channel concat + quadrant-major / batch-folded
    # pixel axis (quadrant, batch, pixel).  Quadrant q = 2*w_half + h_half.
    x = jnp.concatenate([x_l, x_g], axis=1)              # (B, cin, H, W)
    x = x.reshape(b, cin, 2, h2, 2, w2)                  # (B, C, hh, i, wh, j)
    x = jnp.transpose(x, (1, 4, 2, 0, 3, 5))             # (C, wh, hh, B, i, j)
    x_qm = x.reshape(cin, ntot)

    kernel = functools.partial(_ffc_fused_kernel, out_cl=out_cl, out_cg=out_cg,
                               mid=mid, bnq=bnq)
    vmem = pl.BlockSpec(memory_space=pltpu.MemorySpace.VMEM)

    out_qm = pl.pallas_call(
        kernel,
        out_shape=jax.ShapeDtypeStruct((cout, ntot), jnp.float32),
        in_specs=[vmem] * 8,
        out_specs=vmem,
    )(x_qm, fw['w_a'], fw['b_a'], fw['w_fu'], fw['b_fu'],
      fw['w_lfu'], fw['b_lfu'], fw['w_c2'])

    # Single output layout op back to NCHW, then split local / global rows.
    o = out_qm.reshape(cout, 2, 2, b, h2, w2)            # (C, wh, hh, B, i, j)
    o = jnp.transpose(o, (3, 0, 2, 4, 1, 5))             # (B, C, hh, i, wh, j)
    o = o.reshape(b, cout, h, w)
    return o[:, :out_cl], o[:, out_cl:]


# -----------------------------------------------------------------------------
# Deterministic synthetic parameters
# -----------------------------------------------------------------------------
def init_params(key):
    keys = jax.random.split(key, 12)

    def mk_w(k, cout, cin):
        return jax.random.normal(k, (cout, cin), jnp.float32) * 0.2

    def mk_bn(k, c):
        k1, k2, k3, k4 = jax.random.split(k, 4)
        gamma = jax.random.uniform(k1, (c,), jnp.float32, 0.5, 1.5)
        beta = jax.random.normal(k2, (c,), jnp.float32) * 0.1
        mean = jax.random.normal(k3, (c,), jnp.float32) * 0.1
        var = jax.random.uniform(k4, (c,), jnp.float32, 0.5, 1.5)
        return (gamma, beta, mean, var)

    in_cl = in_cg = 8
    out_cl = out_cg = 8
    mid = out_cg // 2  # 4
    return {
        'w_l2l': mk_w(keys[0], out_cl, in_cl),
        'w_g2l': mk_w(keys[1], out_cl, in_cg),
        'w_l2g': mk_w(keys[2], out_cg, in_cl),
        # SpectralTransform (convg2g)
        'w_c1': mk_w(keys[3], mid, in_cg),
        'bn_c1': mk_bn(keys[4], mid),
        'w_fu': mk_w(keys[5], mid, mid),
        'bn_fu': mk_bn(keys[6], mid),
        'w_lfu': mk_w(keys[7], mid, mid),
        'bn_lfu': mk_bn(keys[8], mid),
        'w_c2': mk_w(keys[9], out_cg, mid),
        # FFC_BN_ACT norms
        'bn_l': mk_bn(keys[10], out_cl),
        'bn_g': mk_bn(keys[11], out_cg),
    }


# -----------------------------------------------------------------------------
# Pure-JAX reference (mirrors the PyTorch forward semantics, NCHW)
# -----------------------------------------------------------------------------
def reference(p, x_l, x_g):
    hi = jax.lax.Precision.HIGHEST

    def conv(x, w):
        return jnp.einsum('oc,bchw->bohw', w, x, precision=hi)

    def bn(x, prm):
        g, beta, m, v = prm
        s = g / jnp.sqrt(v + BN_EPS)
        return x * s[None, :, None, None] + (beta - m * s)[None, :, None, None]

    relu = lambda t: jnp.maximum(t, 0.0)

    out_xl = relu(bn(conv(x_l, p['w_l2l']) + conv(x_g, p['w_g2l']), p['bn_l']))

    y = relu(bn(conv(x_g, p['w_c1']), p['bn_c1']))
    fu = relu(bn(conv(y, p['w_fu']), p['bn_fu']))
    b, c, h, w = y.shape
    xs = jnp.concatenate(jnp.split(y[:, :c // 4], 2, axis=2), axis=1)
    xs = jnp.concatenate(jnp.split(xs, 2, axis=3), axis=1)
    xs = relu(bn(conv(xs, p['w_lfu']), p['bn_lfu']))
    xs = jnp.tile(xs, (1, 1, 2, 2))
    cg2g = conv(y + fu + xs, p['w_c2'])
    out_xg = relu(bn(conv(x_l, p['w_l2g']) + cg2g, p['bn_g']))
    return out_xl, out_xg


if __name__ == "__main__":
    key = jax.random.PRNGKey(0)
    kp, kl, kg = jax.random.split(key, 3)
    params = init_params(kp)

    B, H, W = 2, 16, 16
    x_l = jax.random.normal(kl, (B, 8, H, W), jnp.float32)
    x_g = jax.random.normal(kg, (B, 8, H, W), jnp.float32)

    # BN folding / weight fusion runs once, outside the per-call path.
    folded = jax.block_until_ready(fold_params(params))

    fwd = jax.jit(ffc_bn_act_forward)
    out_l, out_g = fwd(folded, x_l, x_g)
    out_l = jax.block_until_ready(out_l)
    out_g = jax.block_until_ready(out_g)

    ref_l, ref_g = reference(params, x_l, x_g)
    assert out_l.shape == (B, 8, H, W) and out_g.shape == (B, 8, H, W)
    assert jnp.allclose(out_l, ref_l, atol=2e-2, rtol=2e-2)
    assert jnp.allclose(out_g, ref_g, atol=2e-2, rtol=2e-2)

    print("KERNEL_OK")
</pallas_src>

<mosaic_0001>
module attributes {stable_mosaic.version = 11 : i64} {
  func.func @_ffc_fused_kernel(%arg0: memref<16x512xf32, #tpu.memory_space<vmem>>, %arg1: memref<20x16xf32, #tpu.memory_space<vmem>>, %arg2: memref<20x1xf32, #tpu.memory_space<vmem>>, %arg3: memref<4x4xf32, #tpu.memory_space<vmem>>, %arg4: memref<4x1xf32, #tpu.memory_space<vmem>>, %arg5: memref<4x4xf32, #tpu.memory_space<vmem>>, %arg6: memref<4x1xf32, #tpu.memory_space<vmem>>, %arg7: memref<8x4xf32, #tpu.memory_space<vmem>>, %arg8: memref<16x512xf32, #tpu.memory_space<vmem>>) attributes {dimension_semantics = [], scalar_prefetch = 0 : i64, scratch_operands = 0 : i64, tpu.core_type = #tpu.core_type<tc>} {
    %c0 = arith.constant 0 : index
    %c0_0 = arith.constant 0 : index
    %0 = vector.load %arg0[%c0, %c0_0] : memref<16x512xf32, #tpu.memory_space<vmem>>, vector<16x512xf32>
    %c0_1 = arith.constant 0 : index
    %c0_2 = arith.constant 0 : index
    %1 = vector.load %arg1[%c0_1, %c0_2] : memref<20x16xf32, #tpu.memory_space<vmem>>, vector<20x16xf32>
    %cst = arith.constant dense<0.000000e+00> : vector<20x512xf32>
    %2 = tpu.matmul %1, %0, %cst {dimension_numbers = #tpu.dot_dimension_numbers<[1], [0], [0], [1], [0, 0, 1, 1], [], []>} : vector<20x16xf32>, vector<16x512xf32>, vector<20x512xf32> -> vector<20x512xf32>
    %c0_3 = arith.constant 0 : index
    %c0_4 = arith.constant 0 : index
    %3 = vector.load %arg2[%c0_3, %c0_4] : memref<20x1xf32, #tpu.memory_space<vmem>>, vector<20x1xf32>
    %4 = vector.broadcast %3 : vector<20x1xf32> to vector<20x512xf32>
    %5 = arith.addf %2, %4 : vector<20x512xf32>
    %6 = vector.extract_strided_slice %5 {offsets = [0, 0], sizes = [8, 512], strides = [1, 1]} : vector<20x512xf32> to vector<8x512xf32>
    %cst_5 = arith.constant 0.000000e+00 : f32
    %7 = vector.broadcast %cst_5 : f32 to vector<8x512xf32>
    %8 = arith.maximumf %6, %7 : vector<8x512xf32>
    %c0_6 = arith.constant 0 : index
    %c0_7 = arith.constant 0 : index
    %9 = vector.load %arg8[%c0_6, %c0_7] : memref<16x512xf32, #tpu.memory_space<vmem>>, vector<8x512xf32>
    tpu.vector_store %arg8[%c0_6, %c0_7], %8 {strides = array<i32>} : memref<16x512xf32, #tpu.memory_space<vmem>>, vector<8x512xf32>,
    %10 = vector.extract_strided_slice %5 {offsets = [8, 0], sizes = [8, 512], strides = [1, 1]} : vector<20x512xf32> to vector<8x512xf32>
    %11 = vector.extract_strided_slice %5 {offsets = [16, 0], sizes = [4, 512], strides = [1, 1]} : vector<20x512xf32> to vector<4x512xf32>
    %cst_8 = arith.constant 0.000000e+00 : f32
    %12 = vector.broadcast %cst_8 : f32 to vector<4x512xf32>
    %13 = arith.maximumf %11, %12 : vector<4x512xf32>
    %c0_9 = arith.constant 0 : index
    %c0_10 = arith.constant 0 : index
    %14 = vector.load %arg3[%c0_9, %c0_10] : memref<4x4xf32, #tpu.memory_space<vmem>>, vector<4x4xf32>
    %cst_11 = arith.constant dense<0.000000e+00> : vector<4x512xf32>
    %15 = tpu.matmul %14, %13, %cst_11 {dimension_numbers = #tpu.dot_dimension_numbers<[1], [0], [0], [1], [0, 0, 1, 1], [], []>} : vector<4x4xf32>, vector<4x512xf32>, vector<4x512xf32> -> vector<4x512xf32>
    %c0_12 = arith.constant 0 : index
    %c0_13 = arith.constant 0 : index
    %16 = vector.load %arg4[%c0_12, %c0_13] : memref<4x1xf32, #tpu.memory_space<vmem>>, vector<4x1xf32>
    %17 = vector.broadcast %16 : vector<4x1xf32> to vector<4x512xf32>
    %18 = arith.addf %15, %17 : vector<4x512xf32>
    %cst_14 = arith.constant 0.000000e+00 : f32
    %19 = vector.broadcast %cst_14 : f32 to vector<4x512xf32>
    %20 = arith.maximumf %18, %19 : vector<4x512xf32>
    %21 = vector.extract_strided_slice %13 {offsets = [0, 0], sizes = [1, 128], strides = [1, 1]} : vector<4x512xf32> to vector<1x128xf32>
    %22 = vector.extract_strided_slice %13 {offsets = [0, 128], sizes = [1, 128], strides = [1, 1]} : vector<4x512xf32> to vector<1x128xf32>
    %23 = vector.extract_strided_slice %13 {offsets = [0, 256], sizes = [1, 128], strides = [1, 1]} : vector<4x512xf32> to vector<1x128xf32>
    %24 = vector.extract_strided_slice %13 {offsets = [0, 384], sizes = [1, 128], strides = [1, 1]} : vector<4x512xf32> to vector<1x128xf32>
    %25 = tpu.concatenate %21, %22, %23, %24 in 0 : vector<1x128xf32>, vector<1x128xf32>, vector<1x128xf32>, vector<1x128xf32> -> vector<4x128xf32>
    %c0_15 = arith.constant 0 : index
    %c0_16 = arith.constant 0 : index
    %26 = vector.load %arg5[%c0_15, %c0_16] : memref<4x4xf32, #tpu.memory_space<vmem>>, vector<4x4xf32>
    %cst_17 = arith.constant dense<0.000000e+00> : vector<4x128xf32>
    %27 = tpu.matmul %26, %25, %cst_17 {dimension_numbers = #tpu.dot_dimension_numbers<[1], [0], [0], [1], [0, 0, 1, 1], [], []>} : vector<4x4xf32>, vector<4x128xf32>, vector<4x128xf32> -> vector<4x128xf32>
    %c0_18 = arith.constant 0 : index
    %c0_19 = arith.constant 0 : index
    %28 = vector.load %arg6[%c0_18, %c0_19] : memref<4x1xf32, #tpu.memory_space<vmem>>, vector<4x1xf32>
    %29 = vector.broadcast %28 : vector<4x1xf32> to vector<4x128xf32>
    %30 = arith.addf %27, %29 : vector<4x128xf32>
    %cst_20 = arith.constant 0.000000e+00 : f32
    %31 = vector.broadcast %cst_20 : f32 to vector<4x128xf32>
    %32 = arith.maximumf %30, %31 : vector<4x128xf32>
    %c0_21 = arith.constant 0 : index
    %c0_22 = arith.constant 0 : index
    %33 = vector.load %arg7[%c0_21, %c0_22] : memref<8x4xf32, #tpu.memory_space<vmem>>, vector<8x4xf32>
    %34 = arith.addf %13, %20 : vector<4x512xf32>
    %cst_23 = arith.constant dense<0.000000e+00> : vector<8x512xf32>
    %35 = tpu.matmul %33, %34, %cst_23 {dimension_numbers = #tpu.dot_dimension_numbers<[1], [0], [0], [1], [0, 0, 1, 1], [], []>} : vector<8x4xf32>, vector<4x512xf32>, vector<8x512xf32> -> vector<8x512xf32>
    %36 = arith.addf %10, %35 : vector<8x512xf32>
    %cst_24 = arith.constant dense<0.000000e+00> : vector<8x128xf32>
    %37 = tpu.matmul %33, %32, %cst_24 {dimension_numbers = #tpu.dot_dimension_numbers<[1], [0], [0], [1], [0, 0, 1, 1], [], []>} : vector<8x4xf32>, vector<4x128xf32>, vector<8x128xf32> -> vector<8x128xf32>
    %38 = vector.extract_strided_slice %36 {offsets = [0, 0], sizes = [8, 128], strides = [1, 1]} : vector<8x512xf32> to vector<8x128xf32>
    %39 = arith.addf %38, %37 : vector<8x128xf32>
    %cst_25 = arith.constant 0.000000e+00 : f32
    %40 = vector.broadcast %cst_25 : f32 to vector<8x128xf32>
    %41 = arith.maximumf %39, %40 : vector<8x128xf32>
    %c8 = arith.constant 8 : index
    %c0_26 = arith.constant 0 : index
    %42 = vector.load %arg8[%c8, %c0_26] : memref<16x512xf32, #tpu.memory_space<vmem>>, vector<8x128xf32>
    tpu.vector_store %arg8[%c8, %c0_26], %41 {strides = array<i32>} : memref<16x512xf32, #tpu.memory_space<vmem>>, vector<8x128xf32>,
    %43 = vector.extract_strided_slice %36 {offsets = [0, 128], sizes = [8, 128], strides = [1, 1]} : vector<8x512xf32> to vector<8x128xf32>
    %44 = arith.addf %43, %37 : vector<8x128xf32>
    %cst_27 = arith.constant 0.000000e+00 : f32
    %45 = vector.broadcast %cst_27 : f32 to vector<8x128xf32>
    %46 = arith.maximumf %44, %45 : vector<8x128xf32>
    %c8_28 = arith.constant 8 : index
    %c128 = arith.constant 128 : index
    %47 = vector.load %arg8[%c8_28, %c128] : memref<16x512xf32, #tpu.memory_space<vmem>>, vector<8x128xf32>
    tpu.vector_store %arg8[%c8_28, %c128], %46 {strides = array<i32>} : memref<16x512xf32, #tpu.memory_space<vmem>>, vector<8x128xf32>,
    %48 = vector.extract_strided_slice %36 {offsets = [0, 256], sizes = [8, 128], strides = [1, 1]} : vector<8x512xf32> to vector<8x128xf32>
    %49 = arith.addf %48, %37 : vector<8x128xf32>
    %cst_29 = arith.constant 0.000000e+00 : f32
    %50 = vector.broadcast %cst_29 : f32 to vector<8x128xf32>
    %51 = arith.maximumf %49, %50 : vector<8x128xf32>
    %c8_30 = arith.constant 8 : index
    %c256 = arith.constant 256 : index
    %52 = vector.load %arg8[%c8_30, %c256] : memref<16x512xf32, #tpu.memory_space<vmem>>, vector<8x128xf32>
    tpu.vector_store %arg8[%c8_30, %c256], %51 {strides = array<i32>} : memref<16x512xf32, #tpu.memory_space<vmem>>, vector<8x128xf32>,
    %53 = vector.extract_strided_slice %36 {offsets = [0, 384], sizes = [8, 128], strides = [1, 1]} : vector<8x512xf32> to vector<8x128xf32>
    %54 = arith.addf %53, %37 : vector<8x128xf32>
    %cst_31 = arith.constant 0.000000e+00 : f32
    %55 = vector.broadcast %cst_31 : f32 to vector<8x128xf32>
    %56 = arith.maximumf %54, %55 : vector<8x128xf32>
    %c8_32 = arith.constant 8 : index
    %c384 = arith.constant 384 : index
    %57 = vector.load %arg8[%c8_32, %c384] : memref<16x512xf32, #tpu.memory_space<vmem>>, vector<8x128xf32>
    tpu.vector_store %arg8[%c8_32, %c384], %56 {strides = array<i32>} : memref<16x512xf32, #tpu.memory_space<vmem>>, vector<8x128xf32>,
    return
  }
}

</mosaic_0001>

<bundles_post_ra>
// kernel: ffc_bn_act_forward.1
= control target key start
LH: loop header
LB: loop body
LE: loop exit
PB: predicated region body
PF: predicated region fallthrough
CT: control target
= control target key end

     0   :  { %v824_v3 = vmov 0.0   ;;  %v825_v8 = vmov 0   ;;  %vm58_vm0 = vcmask 130048   ;;  %vm257_vm1 = vcmask 1043456   ;;  %s997_s0 = inlined_call_operand.vmem [shape: f32[16,512], index: 0, kind: input, shape index: {}]   ;;  %s998_s2 = inlined_call_operand.vmem [shape: f32[20,1], index: 2, kind: input, shape index: {}]   ;;  %s999_s1 = inlined_call_operand.vmem [shape: f32[20,16], index: 1, kind: input, shape index: {}]   ;;  %s1000_s4 = inlined_call_operand.vmem [shape: f32[4,1], index: 4, kind: input, shape index: {}]   ;;  %s1001_s6 = inlined_call_operand.vmem [shape: f32[4,1], index: 6, kind: input, shape index: {}]   ;;  %s1002_s8 = inlined_call_operand.vmem [shape: f32[16,512], index: 8, kind: output, shape index: {}]   ;;  %s1003_s3 = inlined_call_operand.vmem [shape: f32[4,4], index: 3, kind: input, shape index: {}]   ;;  %s1004_s5 = inlined_call_operand.vmem [shape: f32[4,4], index: 5, kind: input, shape index: {}]   ;;  %s1005_s7 = inlined_call_operand.vmem [shape: f32[8,4], index: 7, kind: input, shape index: {}]  }
   0x1   :  { %v30_v0 = vld [vmem:[%s997_s0 + $0x8] sm:$0xff]  ;;  %v32_v2 = vld [vmem:[%s997_s0 + $0x18] sm:$0xff]  ;;  %132 = vmatprep.mubr.f32.mxu0 %v824_v3  ;;  %215 = vmatprep.mubr.f32.mxu1 %v824_v3  ;;  %v29_v6 = vld [vmem:[%s997_s0] sm:$0xff]  ;;  %vm422_vm2 = vcmask 1040384   ;;  %vm253_vm3 = vcmask 31744   ;;  %vm424_vm4 = vcmask 1041408  }
   0x2   :  { %v34_v1 = vld [vmem:[%s997_s0 + $0x28] sm:$0xff]  ;;  %v36_v5 = vld [vmem:[%s997_s0 + $0x38] sm:$0xff]  ;;  %v33_v7 = vld [vmem:[%s997_s0 + $0x20] sm:$0xff]  ;;  %822 = vset.pattern.permute.xlu0 %v825_v8  ;;  %823 = vset.pattern.permute.xlu1 %v825_v8  ;;  %vm426_vm5 = vcmask 1042432   ;;  %vm826_vm6 = vmmov 0  }
   0x3   :  { %v803_v4 = vpack.c.bf16 %v34_v1, %v30_v0  ;;  %v807_v9 = vpack.c.bf16 %v36_v5, %v32_v2  ;;  %v805_v10 = vpack.c.bf16 %v33_v7, %v29_v6  ;;  %v31_v11 = vld [vmem:[%s997_s0 + $0x10] sm:$0xff]  ;;  %v37_v15 = vld [vmem:[%s999_s1] sm:$0xff]  ;;  %v38_v17 = vld [vmem:[%s999_s1 + $0x8] sm:$0xff] }
   0x4   :  { %v35_v12 = vld [vmem:[%s997_s0 + $0x30] sm:$0xff]  ;;  %v247_v16 = vld [vmem:[%s1000_s4] sm:$0xf]  ;;  %v41_v21 = vld [vmem:[%s998_s2 + $0x8] sm:$0xff] }
   0x5   :  { %804 = vmatprep.subr.bf16.mxu0 %v803_v4  ;;  %v809_v13 = vpack.c.bf16 %v35_v12, %v31_v11  ;;  %v42_v14 = vld [vmem:[%s998_s2 + $0x10] sm:$0xf]  ;;  %808 = vmatprep.subr.bf16.mxu1 %v807_v9  ;;  %v40_v18 = vld [vmem:[%s998_s2] sm:$0xff] }
   0x6   :  { %806 = vmatpush1.bf16.msra.mxu0 %v805_v10  ;;  %55 = vperm.xlu0 %822, %v42_v14   ;;  %v39_v19 = vld [vmem:[%s999_s1 + $0x10] sm:$0xf]  ;;  %v429_v20 = vld [vmem:[%s1001_s6] sm:$0xf] }
   0x7   :  { %810 = vmatpush1.bf16.msra.mxu1 %v809_v13  ;;  %432 = vperm.xlu1 %823, %v429_v20   ;;  %v246_v49 = vld [vmem:[%s1003_s3] sm:$0xf] }
   0x8   :  { %v428_v55 = vld [vmem:[%s1004_s5] sm:$0xf] }
   0x9   :  { %767 = vmatmul.mubr.msk.f32.vlgmr.msra.gmra.mrb[0].mxu0 %vm58_vm0, %v37_v15  ;;  %v512_v13 = vld [vmem:[%s1005_s7] sm:$0xff] }
   0xa   :  { %770 = vmatmul.mubr.msk.f32.vlgmr.msra.gmra.mrb[0].mxu1 %vm58_vm0, %v37_v15  ;;  %138 = vmatprep.mubr.f32.mxu0 %v824_v3 }
   0xb   :  { %221 = vmatprep.mubr.f32.mxu1 %v824_v3  ;;  %250 = vperm.xlu0 %822, %v247_v16  }
   0xc   :  { %50 = vperm.xlu1 %823, %v41_v21  }
   0xd   :  { %768 = vmatmul.mubr.msk.f32.gmra.mrb[2].mxu0 %vm58_vm0, %v38_v17 }
   0xe   :  { %771 = vmatmul.mubr.msk.f32.gmra.mrb[2].mxu1 %vm58_vm0, %v38_v17  ;;  %144 = vmatprep.mubr.f32.mxu0 %v824_v3 }
   0xf   :  { %227 = vmatprep.mubr.f32.mxu1 %v824_v3  ;;  %45 = vperm.xlu0 %822, %v40_v18  }
  0x11   :  { %769 = vmatmul.mubr.msk.f32.gmra.mrb[4].mxu0 %vm58_vm0, %v39_v19 }
  0x12   :  { %772 = vmatmul.mubr.msk.f32.gmra.mrb[4].mxu1 %vm58_vm0, %v39_v19  ;;  %334 = vmatprep.mubr.f32.mxu0 %v824_v3 }
  0x13   :  { %405 = vmatprep.mubr.f32.mxu1 %v824_v3 }
  0x85   :  { %v56_v22 = vpop.permute.xlu0 %55 }
  0x86   :  { %v433_v5 = vpop.permute.xlu1 %432 }
  0x8a   :  { %v934_v23 = vpop.permute.xlu0 %250 }
  0x8b   :  { %v51_v16 = vpop.permute.xlu1 %50 }
  0x8e   :  { %v46_v24 = vpop.permute.xlu0 %45 }
  0xdc   :  { %v134_v25 = vpop.f32.mrb[0].mxu0 }
  0xdd   :  { %v135_v26 = vadd.f32 %v134_v25, %v46_v24  ;;  %v217_v27 = vpop.f32.mrb[0].mxu1  ;;  %v136_v28 = vpop.f32.mrb[1].mxu0 }
  0xde   :  { %v218_v29 = vadd.f32 %v217_v27, %v46_v24  ;;  %v137_v30 = vadd.f32 %v136_v28, %v46_v24  ;;  %v219_v31 = vpop.f32.mrb[1].mxu1 }
  0xdf   :  { %v234_v32 = vmax.f32 %v135_v26, 0.0  ;;  %v220_v33 = vadd.f32 %v219_v31, %v46_v24 }
  0xe0   :  { %v236_v34 = vmax.f32 %v218_v29, 0.0  ;;  %v235_v35 = vmax.f32 %v137_v30, 0.0 }
  0xe1   :  { %238 = vst [vmem:[%s1002_s8] sm:$0xff] %v234_v32  ;;  %v237_v36 = vmax.f32 %v220_v33, 0.0 }
  0xe2   :  { %240 = vst [vmem:[%s1002_s8 + $0x10] sm:$0xff] %v236_v34  ;;  %239 = vst [vmem:[%s1002_s8 + $0x8] sm:$0xff] %v235_v35 }
  0xe3   :  { %241 = vst [vmem:[%s1002_s8 + $0x18] sm:$0xff] %v237_v36 }
  0xe4   :  { %v146_v37 = vpop.f32.mrb[4].mxu0 }
  0xe5   :  { %v147_v38 = vadd.f32 %v146_v37, %v56_v22  ;;  %v229_v39 = vpop.f32.mrb[4].mxu1  ;;  %v148_v40 = vpop.f32.mrb[5].mxu0 }
  0xe6   :  { %v230_v41 = vadd.f32 %v229_v39, %v56_v22  ;;  %v149_v42 = vadd.f32 %v148_v40, %v56_v22  ;;  %v231_v43 = vpop.f32.mrb[5].mxu1 }
  0xe7   :  { %v242_v44 = vmax.f32 %v147_v38, 0.0  ;;  %v232_v45 = vadd.f32 %v231_v43, %v56_v22 }
  0xe8   :  { %v244_v46 = vmax.f32 %v230_v41, 0.0  ;;  %v243_v47 = vmax.f32 %v149_v42, 0.0 }
  0xe9   :  { %v245_v48 = vmax.f32 %v232_v45, 0.0 }
  0xea   :  { %v416_v50 = vrot.slane %v243_v47, 7  ;;  %773 = vmatprep.subr.msk.mxu0 %vm257_vm1, %v243_v47  ;;  %v418_v51 = vrot.slane %v244_v46, 6 }
  0xeb   :  { %776 = vmatprep.subr.msk.mxu1 %vm257_vm1, %v245_v48  ;;  %774 = vmatpush1.msk.msra.mxu0 %vm257_vm1, %v242_v44  ;;  %v420_v53 = vrot.slane %v245_v48, 5 }
  0xec   :  { %v423_v52 = vsel %vm422_vm2, %v242_v44, %v416_v50  ;;  %777 = vmatpush1.msk.msra.mxu1 %vm257_vm1, %v244_v46  ;;  %775 = vmatmul.mubr.msk.f32.vlgmr.msra.gmra.mrb[6].mxu0 %vm253_vm3, %v246_v49 }
  0xed   :  { %778 = vmatmul.mubr.msk.f32.vlgmr.msra.gmra.mrb[6].mxu1 %vm253_vm3, %v246_v49  ;;  %793 = vmatprep.subr.mxu0 %v824_v3  ;;  %v425_v54 = vsel %vm424_vm4, %v423_v52, %v418_v51 }
  0xee   :  { %v427_v56 = vsel %vm426_vm5, %v425_v54, %v420_v53  ;;  %795 = vmatprep.mubr.msk.f32.mxu0 %vm826_vm6, %v824_v3  ;;  %667 = vmatprep.mubr.f32.mxu1 %v824_v3 }
  0xef   :  { %794 = vmatpush3.msk.msra.mxu0 %vm257_vm1, %v427_v56 }
  0xf0   :  { %796 = vmatmul.mubr.msk.f32.vlgmr.msra.gmra.mrb[8].mxu0 %vm253_vm3, %v428_v55 }
  0xf1   :  { %596 = vmatprep.mubr.f32.mxu0 %v824_v3 }
 0x1bf   :  { %v336_v57 = vpop.f32.mrb[6].mxu0 }
 0x1c0   :  { %v337_v58 = vadd.f32 %v336_v57, %v934_v23  ;;  %v407_v59 = vpop.f32.mrb[6].mxu1  ;;  %v338_v60 = vpop.f32.mrb[7].mxu0 }
 0x1c1   :  { %v408_v61 = vadd.f32 %v407_v59, %v934_v23  ;;  %v339_v62 = vadd.f32 %v338_v60, %v934_v23  ;;  %v409_v63 = vpop.f32.mrb[7].mxu1 }
 0x1c2   :  { %v412_v0 = vmax.f32 %v337_v58, 0.0  ;;  %v410_v1 = vadd.f32 %v409_v63, %v934_v23 }
 0x1c3   :  { %v414_v2 = vmax.f32 %v408_v61, 0.0  ;;  %v413_v4 = vmax.f32 %v339_v62, 0.0  ;;  %v507_v6 = vpop.f32.mrb[8].mxu0 }
 0x1c4   :  { %v415_v7 = vmax.f32 %v410_v1, 0.0  ;;  %v508_v8 = vadd.f32 %v507_v6, %v433_v5  ;;  %v797_v9 = vpop.f32.mrb[9].mxu0  ;;  %v513_v11 = vadd.f32 %v412_v0, %v242_v44 }
 0x1c5   :  { %v514_v10 = vadd.f32 %v413_v4, %v243_v47  ;;  %v515_v14 = vadd.f32 %v414_v2, %v244_v46 }
 0x1c6   :  { %v516_v12 = vadd.f32 %v415_v7, %v245_v48  ;;  %v511_v15 = vmax.f32 %v508_v8, 0.0 }
 0x1c7   :  { %781 = vmatprep.subr.msk.mxu0 %vm257_vm1, %v514_v10 }
 0x1c8   :  { %784 = vmatprep.subr.msk.mxu1 %vm257_vm1, %v516_v12  ;;  %782 = vmatpush1.msk.msra.mxu0 %vm257_vm1, %v513_v11 }
 0x1c9   :  { %785 = vmatpush1.msk.msra.mxu1 %vm257_vm1, %v515_v14  ;;  %783 = vmatmul.mubr.msk.f32.vlgmr.msra.gmra.mrb[2].mxu0 %vm253_vm3, %v512_v13 }
 0x1ca   :  { %786 = vmatmul.mubr.msk.f32.vlgmr.msra.gmra.mrb[2].mxu1 %vm253_vm3, %v512_v13  ;;  %798 = vmatprep.subr.mxu1 %v824_v3 }
 0x1cb   :  { %799 = vmatpush3.msk.msra.mxu1 %vm257_vm1, %v511_v15  ;;  %800 = vmatprep.mubr.msk.f32.mxu1 %vm826_vm6, %v824_v3 }
 0x1ce   :  { %801 = vmatmul.mubr.msk.f32.vlgmr.msra.gmra.mrb[8].mxu1 %vm253_vm3, %v512_v13 }
 0x29c   :  { %v598_v17 = vpop.f32.mrb[2].mxu0 }
 0x29d   :  { %v669_v18 = vpop.f32.mrb[2].mxu1  ;;  %v600_v19 = vpop.f32.mrb[3].mxu0  ;;  %v811_v23 = vadd.f32 %v598_v17, %v51_v16 }
 0x29e   :  { %v812_v20 = vadd.f32 %v600_v19, %v51_v16  ;;  %v671_v21 = vpop.f32.mrb[3].mxu1  ;;  %v813_v24 = vadd.f32 %v669_v18, %v51_v16 }
 0x29f   :  { %v814_v22 = vadd.f32 %v671_v21, %v51_v16 }
 0x2a1   :  { %v747_v25 = vpop.f32.mrb[8].mxu1 }
 0x2a2   :  { %v751_v26 = vadd.f32 %v811_v23, %v747_v25  ;;  %v754_v27 = vadd.f32 %v812_v20, %v747_v25  ;;  %v757_v28 = vadd.f32 %v813_v24, %v747_v25  ;;  %v760_v29 = vadd.f32 %v814_v22, %v747_v25  ;;  %v802_v30 = vpop.f32.mrb[9].mxu1 }
 0x2a4   :  { %v752_v31 = vmax.f32 %v751_v26, 0.0  ;;  %v755_v32 = vmax.f32 %v754_v27, 0.0  ;;  %v758_v3 = vmax.f32 %v757_v28, 0.0  ;;  %v761_v33 = vmax.f32 %v760_v29, 0.0 }
 0x2a6   :  { %753 = vst [vmem:[%s1002_s8 + $0x20] sm:$0xff] %v752_v31  ;;  %756 = vst [vmem:[%s1002_s8 + $0x28] sm:$0xff] %v755_v32 }
 0x2a7   :  { %759 = vst [vmem:[%s1002_s8 + $0x30] sm:$0xff] %v758_v3  ;;  %762 = vst [vmem:[%s1002_s8 + $0x38] sm:$0xff] %v761_v33 }

</bundles_post_ra>
